<compile_context>
chip_gen: v6e
topology: v6e:2x2x1
jax: 0.10.0
libtpu: 0.0.40
codegen_flags: <defaults>
</compile_context>

<pallas_src>
import math
import jax
import jax.numpy as jnp
from jax.experimental import pallas as pl
from jax.experimental.pallas import tpu as pltpu


def _round_up(x, m):
    return ((x + m - 1) // m) * m


def _pad2(w, rows, cols):
    return jnp.pad(w, ((0, rows - w.shape[0]), (0, cols - w.shape[1])))


def _row_tiling(m):
    """Return (row_tile, padded_rows) with padded_rows % row_tile == 0.

    Uses >= 2 grid steps whenever possible so the 'parallel' axis can be
    sharded across both v7x TensorCores; caps the tile at 256 rows so the
    per-step working set stays well inside v7x's 64 MiB VMEM.
    """
    mp = _round_up(m, 8)
    if mp <= 8:
        return mp, mp
    if mp <= 256:
        tm = _round_up((mp + 1) // 2, 8)
        return tm, _round_up(mp, tm)
    tm = 256
    return tm, _round_up(mp, tm)


# ---------------------------------------------------------------------------
# Kernel 1: exact pairwise squared distances (encoder points x decoder points)
#           sum_c (e_c - d_c)^2  -- three VPU broadcast MACs, lane-dense output
# ---------------------------------------------------------------------------
def pairwise_sqdist(enc_pos, dec_pos):
    """enc_pos [M,3], dec_pos [N,3] -> d2 [M,N] (float32, exact)."""
    M = enc_pos.shape[0]
    N = dec_pos.shape[0]
    TM, Mp = _row_tiling(M)
    Np = _round_up(N, 128)                                   # lane-dense stores

    ep = jnp.pad(enc_pos.astype(jnp.float32), ((0, Mp - M), (0, 0)))      # [Mp, 3]
    dpt = jnp.pad(dec_pos.astype(jnp.float32), ((0, Np - N), (0, 0))).T   # [3, Np]

    def kernel(e_ref, dpt_ref, out_ref):
        e = e_ref[...]                                       # [TM, 3]
        dp = dpt_ref[...]                                    # [3, Np]
        acc = jnp.zeros((TM, Np), jnp.float32)
        for c in range(3):                                   # exact, VPU-only
            d = e[:, c:c + 1] - dp[c:c + 1, :]
            acc = acc + d * d
        out_ref[...] = acc

    out = pl.pallas_call(
        kernel,
        out_shape=jax.ShapeDtypeStruct((Mp, Np), jnp.float32),
        grid=(Mp // TM,),
        in_specs=[
            pl.BlockSpec((TM, 3), lambda i: (i, 0)),
            pl.BlockSpec((3, Np), lambda i: (0, 0)),
        ],
        out_specs=pl.BlockSpec((TM, Np), lambda i: (i, 0)),
        compiler_params=pltpu.CompilerParams(dimension_semantics=("parallel",)),
    )(ep, dpt)
    return out[:M, :N]


# ---------------------------------------------------------------------------
# Kernel 2: fused InterpolationStage (+ skip connection, optionally + final Linear)
# ---------------------------------------------------------------------------
def interpolation_stage(enc_feat, nbr_feat_km, p, decoder_dim,
                        final_w=None, final_b=None):
    """enc_feat [M,E], nbr_feat_km [K,M,D] (neighbour-major) -> [M,O] or [M,Dout]."""
    M, E = enc_feat.shape
    K, _, D = nbr_feat_km.shape
    O = p["wc2"].shape[1]
    fuse = final_w is not None
    Dout = final_w.shape[1] if fuse else O
    scale = 1.0 / math.sqrt(decoder_dim)
    inv_O = 1.0 / O

    Dp = _round_up(D, 128)
    Op = _round_up(O, 128)
    OUTW = _round_up(Dout, 128) if fuse else Op
    WE = Dp + 2 * Op

    TM, Mp = _row_tiling(M)
    bf16 = jnp.bfloat16

    # --- glue: row padding only (neighbours already neighbour-major) -------
    e_pad = jnp.pad(enc_feat.astype(jnp.float32), ((0, Mp - M), (0, 0)))
    n_pad = jnp.pad(nbr_feat_km.astype(jnp.float32),
                    ((0, 0), (0, Mp - M), (0, 0)))                         # [K, Mp, D]

    # --- lane-padded, fused weight packing (padded lanes are all-zero) -----
    we = jnp.concatenate([_pad2(p["wq"], E, Dp),
                          _pad2(p["wc1"][D:], E, Op),
                          _pad2(p["wsk"], E, Op)], axis=1).astype(bf16)    # [E, WE]
    be = jnp.concatenate([_pad2(p["bq"], 1, Dp),
                          _pad2(p["bc1"], 1, Op),
                          _pad2(p["bsk"], 1, Op)], axis=1).astype(jnp.float32)
    wkv = jnp.concatenate([_pad2(p["wk"], D, Dp),
                           _pad2(p["wv"], D, Dp)], axis=1).astype(bf16)    # [D, 2*Dp]
    bkv = jnp.concatenate([_pad2(p["bk"], 1, Dp),
                           _pad2(p["bv"], 1, Dp)], axis=1).astype(jnp.float32)
    wc1a = _pad2(p["wc1"][:D], Dp, Op).astype(bf16)                        # [Dp, Op]
    wc2 = _pad2(p["wc2"], Op, Op).astype(bf16)                             # [Op, Op]
    vo = jnp.concatenate([_pad2(p["bc2"], 1, Op),
                          _pad2(p["gamma"], 1, Op),
                          _pad2(p["beta"], 1, Op)], axis=0).astype(jnp.float32)
    if fuse:
        wf = _pad2(final_w, Op, OUTW).astype(bf16)
        bf = _pad2(final_b, 1, OUTW).astype(jnp.float32)

    def kernel(*refs):
        if fuse:
            (e_ref, n_ref, we_ref, wkv_ref, wc1a_ref, wc2_ref,
             be_ref, bkv_ref, vo_ref, wf_ref, bf_ref, out_ref) = refs
        else:
            (e_ref, n_ref, we_ref, wkv_ref, wc1a_ref, wc2_ref,
             be_ref, bkv_ref, vo_ref, out_ref) = refs

        e = e_ref[...].astype(bf16)                                        # [TM, E]

        # one fused MXU pass over the shared LHS: [q | Wc1b-term | skip]
        eout = (jnp.dot(e, we_ref[...], preferred_element_type=jnp.float32)
                + be_ref[...])                                             # [TM, WE]
        q = eout[:, :Dp]                                                   # + bq
        c1b_term = eout[:, Dp:Dp + Op]                                     # + bc1
        skip_pre = eout[:, Dp + Op:Dp + 2 * Op]                            # + bsk

        wkv_b = wkv_ref[...]
        bkv_v = bkv_ref[...]

        # ---- per-neighbour keys/values, online softmax ---------------------
        # keys_k / vals_k live exactly one unrolled iteration; no [K*TM, D]
        # intermediates, no q replication, no score re-assembly.
        def proj(k):
            kv = (jnp.dot(n_ref[k].astype(bf16), wkv_b,
                          preferred_element_type=jnp.float32) + bkv_v)     # [TM, 2*Dp]
            keys_k = kv[:, :Dp]
            vals_k = kv[:, Dp:]
            s_k = jnp.sum(q * keys_k, axis=-1, keepdims=True) * scale      # [TM, 1]
            return s_k, vals_k

        m_run, v0 = proj(0)
        l_run = jnp.ones_like(m_run)
        acc = v0
        for k in range(1, K):
            s_k, v_k = proj(k)
            m_new = jnp.maximum(m_run, s_k)
            alpha = jnp.exp(m_run - m_new)
            pexp = jnp.exp(s_k - m_new)
            l_run = alpha * l_run + pexp
            acc = alpha * acc + pexp * v_k
            m_run = m_new
        # NOTE: approx reciprocal => attention weights sum to 1 only approximately.
        agg = acc * pl.reciprocal(l_run, approx=True)                      # [TM, Dp]

        vo_v = vo_ref[...]
        bc2 = vo_v[0:1, :]
        gamma = vo_v[1:2, :]
        beta = vo_v[2:3, :]

        # ---- combination MLP on concat([agg, e]) via split weights ---------
        h = (jnp.dot(agg.astype(bf16), wc1a_ref[...],
                     preferred_element_type=jnp.float32) + c1b_term)
        h = jnp.maximum(h, 0.0)
        u = (jnp.dot(h.astype(bf16), wc2_ref[...],
                     preferred_element_type=jnp.float32) + bc2)            # padded lanes = 0

        # ---- LayerNorm over the true O channels (padding-aware stats) ------
        mu = jnp.sum(u, axis=-1, keepdims=True) * inv_O
        var = jnp.maximum(
            jnp.sum(u * u, axis=-1, keepdims=True) * inv_O - mu * mu, 0.0)
        y = (u - mu) * jax.lax.rsqrt(var + 1e-5) * gamma + beta            # padded lanes = 0

        # ---- decoder skip connection: + ReLU(Linear(skip_features)) --------
        z = y + jnp.maximum(skip_pre, 0.0)

        if fuse:
            out_ref[...] = (jnp.dot(z.astype(bf16), wf_ref[...],
                                    preferred_element_type=jnp.float32)
                            + bf_ref[...])
        else:
            out_ref[...] = z

    const2 = lambda i: (0, 0)
    in_specs = [
        pl.BlockSpec((TM, E), lambda i: (i, 0)),          # enc_feat tile
        pl.BlockSpec((K, TM, D), lambda i: (0, i, 0)),    # neighbours (neighbour-major)
        pl.BlockSpec((E, WE), const2),                    # [Wq | Wc1b | Wskip]
        pl.BlockSpec((D, 2 * Dp), const2),                # [Wk | Wv]
        pl.BlockSpec((Dp, Op), const2),                   # Wc1[:D]
        pl.BlockSpec((Op, Op), const2),                   # Wc2
        pl.BlockSpec((1, WE), const2),                    # [bq | bc1 | bsk]
        pl.BlockSpec((1, 2 * Dp), const2),                # [bk | bv]
        pl.BlockSpec((3, Op), const2),                    # [bc2; gamma; beta]
    ]
    inputs = [e_pad, n_pad, we, wkv, wc1a, wc2, be, bkv, vo]
    if fuse:
        in_specs += [pl.BlockSpec((Op, OUTW), const2),
                     pl.BlockSpec((1, OUTW), const2)]
        inputs += [wf, bf]

    out = pl.pallas_call(
        kernel,
        out_shape=jax.ShapeDtypeStruct((Mp, OUTW), jnp.float32),
        grid=(Mp // TM,),
        in_specs=in_specs,
        out_specs=pl.BlockSpec((TM, OUTW), lambda i: (i, 0)),
        compiler_params=pltpu.CompilerParams(dimension_semantics=("parallel",)),
    )(*inputs)
    return out[:M, :Dout] if fuse else out[:M, :O]


# ---------------------------------------------------------------------------
# Decoder forward (glue: kNN top-k + gather in plain JAX)
# ---------------------------------------------------------------------------
def decoder_forward(params, encoder_features, positions, sampled_labels,
                    stages_config, knn_param):
    x = encoder_features[-1]
    pos = positions[-1]
    labels = sampled_labels[-1]
    num_stages = len(stages_config) - 1
    for i in range(num_stages):
        skip_feat = encoder_features[-(i + 2)]
        skip_pos = positions[-(i + 2)]
        skip_lbls = sampled_labels[-(i + 2)]
        decoder_dim = stages_config[-(i + 1)]["hidden_dim"]

        # kNN: for each encoder (skip) point, the k nearest decoder points.
        d2 = pairwise_sqdist(skip_pos, pos)                  # [M, N]  (Pallas)
        _, nbr_idx = jax.lax.top_k(-d2, knn_param)           # [M, K]
        nbr_feat = jnp.take(x, nbr_idx.T, axis=0)            # [K, M, D] neighbour-major

        is_last = (i == num_stages - 1)
        x = interpolation_stage(
            skip_feat, nbr_feat, params["stages"][i], decoder_dim,
            final_w=params["wf"] if is_last else None,
            final_b=params["bf"] if is_last else None)
        pos = skip_pos
        labels = skip_lbls
    return x, labels


# ---------------------------------------------------------------------------
# Deterministic parameter / input construction
# ---------------------------------------------------------------------------
def init_params(key, stages_config, main_output_dim):
    params = {"stages": []}
    num_stages = len(stages_config) - 1
    for i in range(num_stages):
        D = stages_config[-(i + 1)]["hidden_dim"]       # decoder_dim
        E = stages_config[-(i + 2)]["hidden_dim"]       # encoder_dim == out_dim
        O = E
        keys = jax.random.split(key, 10)
        key = keys[-1]
        s = 0.05
        stage = {
            "wq":  jax.random.normal(keys[0], (E, D), jnp.float32) * s,
            "bq":  jnp.zeros((1, D), jnp.float32),
            "wk":  jax.random.normal(keys[1], (D, D), jnp.float32) * s,
            "bk":  jnp.zeros((1, D), jnp.float32),
            "wv":  jax.random.normal(keys[2], (D, D), jnp.float32) * s,
            "bv":  jnp.zeros((1, D), jnp.float32),
            "wc1": jax.random.normal(keys[3], (D + E, O), jnp.float32) * s,
            "bc1": jax.random.normal(keys[4], (1, O), jnp.float32) * s,
            "wc2": jax.random.normal(keys[5], (O, O), jnp.float32) * s,
            "bc2": jax.random.normal(keys[6], (1, O), jnp.float32) * s,
            "gamma": jnp.ones((1, O), jnp.float32),
            "beta":  jnp.zeros((1, O), jnp.float32),
            "wsk": jax.random.normal(keys[7], (E, O), jnp.float32) * s,
            "bsk": jax.random.normal(keys[8], (1, O), jnp.float32) * s,
        }
        params["stages"].append(stage)
    k1, k2 = jax.random.split(key)
    params["wf"] = jax.random.normal(k1, (stages_config[0]["hidden_dim"],
                                          main_output_dim), jnp.float32) * 0.05
    params["bf"] = jax.random.normal(k2, (1, main_output_dim), jnp.float32) * 0.05
    return params


if __name__ == "__main__":
    # small synthetic configuration
    stages_config = [{"hidden_dim": 32}, {"hidden_dim": 48}, {"hidden_dim": 64}]
    point_counts = [32, 16, 8]          # per stage (shallow -> deep)
    main_output_dim = 16
    knn_param = 4

    key = jax.random.PRNGKey(0)
    kp, kf, kpos, klbl = jax.random.split(key, 4)
    params = init_params(kp, stages_config, main_output_dim)

    encoder_features, positions, sampled_labels = [], [], []
    fk = jax.random.split(kf, len(stages_config))
    pk = jax.random.split(kpos, len(stages_config))
    lk = jax.random.split(klbl, len(stages_config))
    for j, (cfg, n) in enumerate(zip(stages_config, point_counts)):
        encoder_features.append(
            jax.random.normal(fk[j], (n, cfg["hidden_dim"]), jnp.float32))
        positions.append(jax.random.normal(pk[j], (n, 3), jnp.float32))
        sampled_labels.append(
            jax.random.randint(lk[j], (n,), 0, 10, dtype=jnp.int32))

    out, labels = decoder_forward(params, encoder_features, positions,
                                  sampled_labels, stages_config, knn_param)
    out = jax.block_until_ready(out)
    labels = jax.block_until_ready(labels)

    assert out.shape == (point_counts[0], main_output_dim), out.shape
    assert labels.shape == (point_counts[0],), labels.shape
    assert bool(jnp.all(jnp.isfinite(out)))
    print("KERNEL_OK")
</pallas_src>

<mosaic_0001>
module attributes {stable_mosaic.version = 11 : i64} {
  func.func @kernel(%arg0: i32, %arg1: memref<8x3xf32, #tpu.memory_space<vmem>>, %arg2: memref<3x128xf32, #tpu.memory_space<vmem>>, %arg3: memref<8x128xf32, #tpu.memory_space<vmem>>) attributes {dimension_semantics = [#tpu.dimension_semantics<parallel>], iteration_bounds = array<i64: 2>, scalar_prefetch = 0 : i64, scratch_operands = 0 : i64, tpu.core_type = #tpu.core_type<tc>, window_params = [{transform_indices = @transform_0, window_bounds = array<i64: 8, 3>}, {pipeline_mode = #tpu.pipeline_mode<synchronous>, transform_indices = @transform_1, window_bounds = array<i64: 3, 128>}, {transform_indices = @transform_2, window_bounds = array<i64: 8, 128>}]} {
    %c0 = arith.constant 0 : index
    %c0_0 = arith.constant 0 : index
    %0 = vector.load %arg1[%c0, %c0_0] : memref<8x3xf32, #tpu.memory_space<vmem>>, vector<8x3xf32>
    %c0_1 = arith.constant 0 : index
    %c0_2 = arith.constant 0 : index
    %1 = vector.load %arg2[%c0_1, %c0_2] : memref<3x128xf32, #tpu.memory_space<vmem>>, vector<3x128xf32>
    %cst = arith.constant 0.000000e+00 : f32
    %2 = vector.broadcast %cst : f32 to vector<8x128xf32>
    %3 = vector.extract_strided_slice %0 {offsets = [0, 0], sizes = [8, 1], strides = [1, 1]} : vector<8x3xf32> to vector<8x1xf32>
    %4 = vector.extract_strided_slice %1 {offsets = [0, 0], sizes = [1, 128], strides = [1, 1]} : vector<3x128xf32> to vector<1x128xf32>
    %5 = vector.broadcast %3 : vector<8x1xf32> to vector<8x128xf32>
    %6 = vector.broadcast %4 : vector<1x128xf32> to vector<8x128xf32>
    %7 = arith.subf %5, %6 : vector<8x128xf32>
    %8 = arith.mulf %7, %7 : vector<8x128xf32>
    %9 = arith.addf %2, %8 : vector<8x128xf32>
    %10 = vector.extract_strided_slice %0 {offsets = [0, 1], sizes = [8, 1], strides = [1, 1]} : vector<8x3xf32> to vector<8x1xf32>
    %11 = vector.extract_strided_slice %1 {offsets = [1, 0], sizes = [1, 128], strides = [1, 1]} : vector<3x128xf32> to vector<1x128xf32>
    %12 = vector.broadcast %10 : vector<8x1xf32> to vector<8x128xf32>
    %13 = vector.broadcast %11 : vector<1x128xf32> to vector<8x128xf32>
    %14 = arith.subf %12, %13 : vector<8x128xf32>
    %15 = arith.mulf %14, %14 : vector<8x128xf32>
    %16 = arith.addf %9, %15 : vector<8x128xf32>
    %17 = vector.extract_strided_slice %0 {offsets = [0, 2], sizes = [8, 1], strides = [1, 1]} : vector<8x3xf32> to vector<8x1xf32>
    %18 = vector.extract_strided_slice %1 {offsets = [2, 0], sizes = [1, 128], strides = [1, 1]} : vector<3x128xf32> to vector<1x128xf32>
    %19 = vector.broadcast %17 : vector<8x1xf32> to vector<8x128xf32>
    %20 = vector.broadcast %18 : vector<1x128xf32> to vector<8x128xf32>
    %21 = arith.subf %19, %20 : vector<8x128xf32>
    %22 = arith.mulf %21, %21 : vector<8x128xf32>
    %23 = arith.addf %16, %22 : vector<8x128xf32>
    %c0_3 = arith.constant 0 : index
    %c0_4 = arith.constant 0 : index
    %24 = vector.load %arg3[%c0_3, %c0_4] : memref<8x128xf32, #tpu.memory_space<vmem>>, vector<8x128xf32>
    tpu.vector_store %arg3[%c0_3, %c0_4], %23 {strides = array<i32>} : memref<8x128xf32, #tpu.memory_space<vmem>>, vector<8x128xf32>,
    return
  }
  func.func @transform_0(%arg0: i32) -> (i32, i32) {
    %c0_i32 = arith.constant 0 : i32
    %c0_i32_0 = arith.constant 0 : i32
    return %arg0, %c0_i32 : i32, i32
  }
  func.func @transform_1(%arg0: i32) -> (i32, i32) {
    %c0_i32 = arith.constant 0 : i32
    %c0_i32_0 = arith.constant 0 : i32
    %c0_i32_1 = arith.constant 0 : i32
    return %c0_i32, %c0_i32_0 : i32, i32
  }
  func.func @transform_2(%arg0: i32) -> (i32, i32) {
    %c0_i32 = arith.constant 0 : i32
    %c0_i32_0 = arith.constant 0 : i32
    return %arg0, %c0_i32 : i32, i32
  }
}

</mosaic_0001>

<bundles_post_ra>
// kernel: tpu_custom_call.1
= control target key start
LH: loop header
LB: loop body
LE: loop exit
PB: predicated region body
PF: predicated region fallthrough
CT: control target
= control target key end

     0   :  { %7 = vsyncpa [#allocation3], 0  ;;  %s476_s0 = inlined_call_operand.vmem [shape: f32[16,3], index: 0, kind: input, shape index: {}]   ;;  %s477_s1 = inlined_call_operand.vmem [shape: f32[3,128], index: 1, kind: input, shape index: {}]   ;;  %s478_s2 = inlined_call_operand.hbm [shape: f32[16,128], index: 2, kind: output, shape index: {}]  }
   0x1   :  { %9 = vsyncpa [#allocation3 + $0x1], 0  ;;  %s386_s9 = smov 0   ;;  %s388_s10 = smov 0  }
   0x2   :  { %s390_s11 = smov 0   ;;  %s392_s12 = smov 0  }
   0x3 LB: > { %s407_s13 = sadd.s32 4294967295, %s365_s12   ;;  %s249_s14 = sadd.s32 4294967294, %s365_s12   ;;  %s365_s12 = sphi %s392_s12, %s484_s12   ;;  %s361_s11 = sphi %s390_s11, %s483_s11   ;;  %s357_s10 = sphi %s388_s10, %s482_s10   ;;  %s353_s9 = sphi %s386_s9, %s481_s9  }
   0x4   : > { %s411_s15 = sadd.s32 1, %s365_s12   ;;  %s69_s16 = sadd.s32 1, %s361_s11 }
   0x5   : > { %s66_s17 = ssub.s32 %s365_s12, %s411_s15  ;;  %p79_p0 = scmp.ne.s32.totalorder %s361_s11, %s357_s10 }
   0x6   : > { %p67_p1 = scmp.eq.s32.totalorder %s66_s17, 0  ;;  %p80_p2 = scmp.eq.s32.totalorder %s407_s13, 1 }
   0x7   : > { %p85_p3 = scmp.ne.s32.totalorder %s357_s10, %s353_s9  ;;  %p86_p4 = scmp.eq.s32.totalorder %s249_s14, 1 }
   0x8   : > { %s422_s18 = scalar_select %p67_p1, %s361_s11, %s69_s16  }
   0x9   : > { %p424_p5 = por %p80_p2, %p79_p0  ;;  %p428_p6 = por %p86_p4, %p85_p3 }
   0xa   : > { %p252_p7 = scmp.ge.s32.totalorder %s365_s12, 1  ;;  %p114_p8 = scmp.lt.s32.totalorder %s365_s12, 3 }
   0xc   : > { %p115_p9 = pnand %p252_p7, %p114_p8 }
   0xd   : > { %p135_p10 = scmp.lt.s32.totalorder (!%p115_p9), %s407_s13, 1  ;;  %s132_s28 = sand.u32 (!%p115_p9), 1, %s357_s10  }
   0xe   : > { %118 = sbr.rel (%p115_p9) target bundleno = 174 (0xae), region = 28  ;;  %s253_s29 = sshll.u32 (!%p115_p9), %s132_s28, 3 }
   0xf   : > { %s256_s30 = sshll.u32 (!%p115_p9), %s407_s13, 7  ;;  %s134_s3 = scalar_lea.vmem (!%p115_p9), [#allocation2], %s253_s29 }
  0x10   : > { %s190_s4 = sshll.u32 (!%p115_p9), %s134_s3, 4  ;;  %s188_s7 = scalar_lea.hbm (!%p115_p9), %s478_s2, %s256_s30  ;;  %s191_s4 = int_to_ptr.vmem [resolvable:$true] %s190_s4 }
  0x11   : > { %s177_s8 = scalar_lea.sflag (!%p115_p9), [#allocation3], %s132_s28  ;;  %s305_s14 = scalar_lea.vmem (!%p115_p9), %s191_s4, 128 }
  0x12   : > { %p306_p11 = scmp.ne.s32.totalorder (!%p115_p9), %s191_s4, %s305_s14  ;;  %s370_s16 = smov (!%p115_p9), [#allocation2]  }
  0x13   : > { %v367_v0 = vmov 0   ;;  %v368_v1 = vmov 2   ;;  %s136_s21 = scalar_select %p135_p10, %s407_s13, 1  ;;  %v369_v3 = vmov 1   ;;  %v146_v4 = vlaneseq  ;;  %v140_v8 = vld [vmem:[%s477_s1] sm:$0x7] }
  0x14   : > { %301 = vset.pattern.permute.xlu0 %v367_v0  ;;  %303 = vset.pattern.permute.xlu1 %v368_v1  ;;  %p307_p12 = pnand %p306_p11, %p424_p5  ;;  %s309_s17 = sshll.u32 %s370_s16, 4  ;;  %s310_s17 = int_to_ptr.vmem [resolvable:$false] %s309_s17 }
  0x15   : > { %s254_s22 = sshll.u32 %s136_s21, 3  ;;  %v147_v5 = vshrl.u32 %v146_v4, 7  ;;  %s311_s13 = scalar_lea.vmem %s310_s17, 256 }
  0x16   : > { %s138_s25 = scalar_lea.vmem %s476_s0, %s254_s22  ;;  %p308_p13 = pneg %p307_p12 }
  0x17   : > { %v139_v2 = vld [vmem:[%s138_s25] sm:$0xff]  ;;  %v148_v6 = vsub.s32 0, %v147_v5  ;;  %v170_v7 = vsub.s32 2, %v147_v5  ;;  %v159_v9 = vsub.s32 1, %v147_v5  ;;  %p312_p0 = scmp.lt.s32.totalorder %s191_s4, %s310_s17  ;;  %p313_p1 = scmp.lt.s32.totalorder %s311_s13, %s305_s14 }
  0x18   : > { %143 = vperm.xlu0 %301, %v139_v2   ;;  %165 = vperm.xlu1 %303, %v139_v2  }
  0x19   : > { %v149_v10 = vrot.slane %v140_v8, %v148_v6  ;;  %v171_v12 = vrot.slane %v140_v8, %v170_v7  ;;  %v160_v14 = vrot.slane %v140_v8, %v159_v9  ;;  %p314_p2 = por %p313_p1, %p312_p0 }
  0x1b   : > { %p315_p3 = pnand %p314_p2, %p308_p13 }
  0x1c   : > { %302 = vset.pattern.permute.xlu0 %v369_v3 }
  0x1d   : > { %154 = vperm.xlu0 %302, %v139_v2  }
  0x21   : > { %304 = vset.pattern.permute.xlu0 %v368_v1 }
  0x93   : > { %v144_v11 = vpop.permute.xlu0 %143  ;;  %v166_v13 = vpop.permute.xlu1 %165 }
  0x94   : > { %v150_v15 = vsub.f32 %v144_v11, %v149_v10  ;;  %v172_v16 = vsub.f32 %v166_v13, %v171_v12 }
  0x96   : > { %v151_v19 = vmul.f32 %v150_v15, %v150_v15  ;;  %v173_v21 = vmul.f32 %v172_v16, %v172_v16 }
  0x98   : > { %v155_v17 = vpop.permute.xlu0 %154 }
  0x99   : > { %v161_v18 = vsub.f32 %v155_v17, %v160_v14 }
  0x9b   : > { %v162_v20 = vmul.f32 %v161_v18, %v161_v18 }
  0x9d   : > { %v163_v22 = vadd.f32 %v162_v20, %v151_v19 }
  0x9f   : > { %v174_v23 = vadd.f32 %v173_v21, %v163_v22 }
  0xa1   : > { %175 = vst [vmem:[%s134_s3] sm:$0xff] %v174_v23 }
  0xa2   : > { %318 = shalt.err (!%p315_p3)
}
  0xa3   : > { %s319_s21 = scalar_lea.hbm %s188_s7, 128  ;;  %s323_s24 = scalar_lea.hbm %s478_s2, 256 }
  0xa4   : > { %p320_p4 = scmp.ne.s32.totalorder %s188_s7, %s319_s21  ;;  %p324_p9 = scmp.lt.s32.totalorder %s188_s7, %s478_s2 }
  0xa5   : > { %p325_p10 = scmp.lt.s32.totalorder %s323_s24, %s319_s21 }
  0xa6   : > { %p321_p7 = pnand %p320_p4, %p424_p5 }
  0xa7   : > { %p326_p11 = por %p325_p10, %p324_p9 }
  0xa8   : > { %p322_p8 = pneg %p321_p7 }
  0xaa   : > { %p327_p12 = pnand %p326_p11, %p322_p8 }
  0xac   : > { %330 = shalt.err (!%p327_p12)
}
  0xad   : > { %259 = dma.vmem_to_hbm [thread:$0]  (%p424_p5), %s191_s4, 128, %s188_s7, %s177_s8  }
  0xae PF: > { %p265_p13 = scmp.ge.s32.totalorder %s365_s12, 2  ;;  %s202_s27 = sand.u32 1, %s353_s9  }
  0xaf   : > { %s203_s28 = scalar_lea.sflag [#allocation3], %s202_s27 }
  0xb0   : > { %p262_p0 = pnand %p265_p13, %p428_p6 }
  0xb2   : > { %p263_p1 = pneg %p262_p0 }
  0xb4   : > { %348 = dma.done.wait (%p263_p1), %s203_s28, 128  }
  0xb5   : > { %350 = vsyncadd (%p263_p1), %s203_s28, 4294967168  ;;  %p12_p2 = scmp.ge.s32.totalorder %s411_s15, 4   ;;  %s481_s9 = smov %s357_s10 }
  0xb6   : > { %s482_s10 = smov %s361_s11  ;;  %s483_s11 = smov %s422_s18 }
  0xb7   : > { %s484_s12 = smov %s411_s15  ;;  %14 = sbr.rel (!%p12_p2) target bundleno = 3 (0x3), region = 63 }
  0xbc   :  { %208 = vsyncpa [#allocation3], 1 }
  0xbd   :  { %210 = vsyncpa [#allocation3 + $0x1], 1 }

</bundles_post_ra>
